<compile_context>
chip_gen: v7x
topology: tpu7x:2x2x1
jax: 0.10.0
libtpu: 0.0.40
codegen_flags: <defaults>
</compile_context>

<pallas_src>
import functools
import math

import jax
import jax.numpy as jnp
from jax.experimental import pallas as pl
from jax.experimental.pallas import tpu as pltpu


def _round_up(n: int, m: int) -> int:
    return ((n + m - 1) // m) * m


def _pick_tm(n: int, block_m: int) -> int:
    """Row-tile size: multiple of 8, <= block_m, and >=2 grid steps when possible."""
    if n <= 8:
        return max(n, 1)                     # block == full dim -> always legal
    tm = min(block_m, _round_up(n, 8))
    if pl.cdiv(n, tm) < 2:                   # keep >=2 row tiles -> both TCs on v7x
        tm = _round_up(pl.cdiv(n, 2), 8)
    return tm


def gin_mlp_kernel(x_ref, w1_ref, b1_ref, w2_ref, b2_ref, out_ref):
    x = x_ref[...]

    # Layer 1: relu(x @ W1 + b1)   (W1 = fc1.weight.T, hidden axis zero-padded)
    h = jnp.dot(x, w1_ref[...], preferred_element_type=jnp.float32) + b1_ref[...]
    h = jnp.maximum(h, 0.0)

    # Layer 2: relu(h @ W2 + b2)   (W2 = fc2.weight.T; feed MXU in bf16)
    y = jnp.dot(h.astype(w2_ref.dtype), w2_ref[...],
                preferred_element_type=jnp.float32) + b2_ref[...]
    y = jnp.maximum(y, 0.0)

    out_ref[...] = y.astype(out_ref.dtype)


@functools.partial(jax.jit, static_argnames=("block_m", "compute_dtype"))
def gin_mlp(x, fc1_weight, fc1_bias, fc2_weight, fc2_bias, *,
            block_m=512, compute_dtype=jnp.bfloat16):
    """Mirrors GIN_mlp.forward(x, fc1_weight, fc1_bias, fc2_weight, fc2_bias)."""
    out_dtype = x.dtype
    lead_shape = x.shape[:-1]
    D = x.shape[-1]
    x2d = x.reshape(-1, D).astype(compute_dtype)
    N = x2d.shape[0]

    H = fc1_weight.shape[0]   # 2 * out_channels
    O = fc2_weight.shape[0]   # out_channels
    assert fc1_weight.shape[1] == D and fc2_weight.shape[1] == H

    # Only the hidden axis is padded to a lane-dense width; pads are zero, so with
    # ReLU(0)=0 and zero W2 pad-rows they contribute nothing to the output.
    Hp = _round_up(H, 128)

    # One-time weight prep (fused under jit): transpose + pad hidden axis.
    w1 = jnp.zeros((D, Hp), compute_dtype).at[:, :H].set(fc1_weight.T.astype(compute_dtype))
    b1 = jnp.zeros((1, Hp), jnp.float32).at[0, :H].set(fc1_bias.astype(jnp.float32))
    w2 = jnp.zeros((Hp, O), compute_dtype).at[:H, :].set(fc2_weight.T.astype(compute_dtype))
    b2 = fc2_bias.astype(jnp.float32).reshape(1, O)

    tm = _pick_tm(N, block_m)
    grid = (pl.cdiv(N, tm),)

    in_bytes = jnp.dtype(compute_dtype).itemsize
    out_bytes = jnp.dtype(out_dtype).itemsize
    cost = pl.CostEstimate(
        flops=2 * N * (D * Hp + Hp * O),
        transcendentals=0,
        bytes_accessed=(N * D * in_bytes + D * Hp * in_bytes + Hp * O * in_bytes
                        + (Hp + O) * 4 + N * O * out_bytes),
    )

    out = pl.pallas_call(
        gin_mlp_kernel,
        out_shape=jax.ShapeDtypeStruct((N, O), out_dtype),
        grid_spec=pltpu.PrefetchScalarGridSpec(
            num_scalar_prefetch=0,
            grid=grid,
            in_specs=[
                pl.BlockSpec((tm, D), lambda i: (i, 0)),    # x row tile (pipelined)
                pl.BlockSpec((D, Hp), lambda i: (0, 0)),    # W1 resident in VMEM
                pl.BlockSpec((1, Hp), lambda i: (0, 0)),    # b1 resident
                pl.BlockSpec((Hp, O), lambda i: (0, 0)),    # W2 resident
                pl.BlockSpec((1, O), lambda i: (0, 0)),     # b2 resident
            ],
            out_specs=pl.BlockSpec((tm, O), lambda i: (i, 0)),
        ),
        compiler_params=pltpu.CompilerParams(
            dimension_semantics=("parallel",)),
        cost_estimate=cost,
    )(x2d, w1, b1, w2, b2)

    return out.reshape(*lead_shape, O)


def _reference(x, fc1_weight, fc1_bias, fc2_weight, fc2_bias):
    h = jnp.maximum(x @ fc1_weight.T + fc1_bias, 0.0)
    y = jnp.maximum(h @ fc2_weight.T + fc2_bias, 0.0)
    return y


if __name__ == "__main__":
    # Small shapes consistent with the module: num_nodes x in_channels input.
    num_nodes, in_channels, out_channels = 16, 16, 32
    std = 1.0 / math.sqrt(out_channels)

    key = jax.random.PRNGKey(0)
    kx, k1, k2, k3, k4 = jax.random.split(key, 5)

    x = jax.random.normal(kx, (num_nodes, in_channels), dtype=jnp.float32)

    # Parameter init matching reset_parameters(): U(-std, std).
    fc1_weight = jax.random.uniform(k1, (2 * out_channels, in_channels),
                                    minval=-std, maxval=std, dtype=jnp.float32)
    fc1_bias = jax.random.uniform(k2, (2 * out_channels,),
                                  minval=-std, maxval=std, dtype=jnp.float32)
    fc2_weight = jax.random.uniform(k3, (out_channels, 2 * out_channels),
                                    minval=-std, maxval=std, dtype=jnp.float32)
    fc2_bias = jax.random.uniform(k4, (out_channels,),
                                  minval=-std, maxval=std, dtype=jnp.float32)

    y = gin_mlp(x, fc1_weight, fc1_bias, fc2_weight, fc2_bias)
    y = jax.block_until_ready(y)

    ref = _reference(x, fc1_weight, fc1_bias, fc2_weight, fc2_bias)
    assert y.shape == (num_nodes, out_channels)
    # bf16 matmul inputs (f32 accumulation) -> slightly wider tolerance vs f32 reference.
    assert jnp.allclose(y, ref, atol=2e-2, rtol=2e-2), "mismatch vs JAX reference"

    print("KERNEL_OK")
</pallas_src>

<mosaic_0001>
module attributes {stable_mosaic.version = 11 : i64} {
  func.func @gin_mlp_kernel(%arg0: i32, %arg1: memref<8x16xbf16, #tpu.memory_space<vmem>>, %arg2: memref<16x128xbf16, #tpu.memory_space<vmem>>, %arg3: memref<1x128xf32, #tpu.memory_space<vmem>>, %arg4: memref<128x32xbf16, #tpu.memory_space<vmem>>, %arg5: memref<1x32xf32, #tpu.memory_space<vmem>>, %arg6: memref<8x32xf32, #tpu.memory_space<vmem>>) attributes {dimension_semantics = [#tpu.dimension_semantics<parallel>], iteration_bounds = array<i64: 2>, scalar_prefetch = 0 : i64, scratch_operands = 0 : i64, tpu.core_type = #tpu.core_type<tc>, window_params = [{transform_indices = @transform_0, window_bounds = array<i64: 8, 16>}, {pipeline_mode = #tpu.pipeline_mode<synchronous>, transform_indices = @transform_1, window_bounds = array<i64: 16, 128>}, {pipeline_mode = #tpu.pipeline_mode<synchronous>, transform_indices = @transform_2, window_bounds = array<i64: 1, 128>}, {pipeline_mode = #tpu.pipeline_mode<synchronous>, transform_indices = @transform_3, window_bounds = array<i64: 128, 32>}, {pipeline_mode = #tpu.pipeline_mode<synchronous>, transform_indices = @transform_4, window_bounds = array<i64: 1, 32>}, {transform_indices = @transform_5, window_bounds = array<i64: 8, 32>}]} {
    %c0 = arith.constant 0 : index
    %c0_0 = arith.constant 0 : index
    %0 = vector.load %arg1[%c0, %c0_0] : memref<8x16xbf16, #tpu.memory_space<vmem>>, vector<8x16xbf16>
    %c0_1 = arith.constant 0 : index
    %c0_2 = arith.constant 0 : index
    %1 = vector.load %arg2[%c0_1, %c0_2] : memref<16x128xbf16, #tpu.memory_space<vmem>>, vector<16x128xbf16>
    %cst = arith.constant dense<0.000000e+00> : vector<8x128xf32>
    %2 = tpu.matmul %0, %1, %cst {dimension_numbers = #tpu.dot_dimension_numbers<[1], [0], [0], [1], [0, 0, 1, 1], [], []>} : vector<8x16xbf16>, vector<16x128xbf16>, vector<8x128xf32> -> vector<8x128xf32>
    %c0_3 = arith.constant 0 : index
    %c0_4 = arith.constant 0 : index
    %3 = vector.load %arg3[%c0_3, %c0_4] : memref<1x128xf32, #tpu.memory_space<vmem>>, vector<1x128xf32>
    %4 = vector.broadcast %3 : vector<1x128xf32> to vector<8x128xf32>
    %5 = arith.addf %2, %4 : vector<8x128xf32>
    %cst_5 = arith.constant 0.000000e+00 : f32
    %6 = vector.broadcast %cst_5 : f32 to vector<8x128xf32>
    %7 = arith.maximumf %5, %6 : vector<8x128xf32>
    %8 = arith.truncf %7 : vector<8x128xf32> to vector<8x128xbf16>
    %c0_6 = arith.constant 0 : index
    %c0_7 = arith.constant 0 : index
    %9 = vector.load %arg4[%c0_6, %c0_7] : memref<128x32xbf16, #tpu.memory_space<vmem>>, vector<128x32xbf16>
    %cst_8 = arith.constant dense<0.000000e+00> : vector<8x32xf32>
    %10 = tpu.matmul %8, %9, %cst_8 {dimension_numbers = #tpu.dot_dimension_numbers<[1], [0], [0], [1], [0, 0, 1, 1], [], []>} : vector<8x128xbf16>, vector<128x32xbf16>, vector<8x32xf32> -> vector<8x32xf32>
    %c0_9 = arith.constant 0 : index
    %c0_10 = arith.constant 0 : index
    %11 = vector.load %arg5[%c0_9, %c0_10] : memref<1x32xf32, #tpu.memory_space<vmem>>, vector<1x32xf32>
    %12 = vector.broadcast %11 : vector<1x32xf32> to vector<8x32xf32>
    %13 = arith.addf %10, %12 : vector<8x32xf32>
    %cst_11 = arith.constant 0.000000e+00 : f32
    %14 = vector.broadcast %cst_11 : f32 to vector<8x32xf32>
    %15 = arith.maximumf %13, %14 : vector<8x32xf32>
    %c0_12 = arith.constant 0 : index
    %c0_13 = arith.constant 0 : index
    %16 = vector.load %arg6[%c0_12, %c0_13] : memref<8x32xf32, #tpu.memory_space<vmem>>, vector<8x32xf32>
    tpu.vector_store %arg6[%c0_12, %c0_13], %15 {strides = array<i32>} : memref<8x32xf32, #tpu.memory_space<vmem>>, vector<8x32xf32>,
    return
  }
  func.func @transform_0(%arg0: i32) -> (i32, i32) {
    %c0_i32 = arith.constant 0 : i32
    %c0_i32_0 = arith.constant 0 : i32
    return %arg0, %c0_i32 : i32, i32
  }
  func.func @transform_1(%arg0: i32) -> (i32, i32) {
    %c0_i32 = arith.constant 0 : i32
    %c0_i32_0 = arith.constant 0 : i32
    %c0_i32_1 = arith.constant 0 : i32
    return %c0_i32, %c0_i32_0 : i32, i32
  }
  func.func @transform_2(%arg0: i32) -> (i32, i32) {
    %c0_i32 = arith.constant 0 : i32
    %c0_i32_0 = arith.constant 0 : i32
    %c0_i32_1 = arith.constant 0 : i32
    return %c0_i32, %c0_i32_0 : i32, i32
  }
  func.func @transform_3(%arg0: i32) -> (i32, i32) {
    %c0_i32 = arith.constant 0 : i32
    %c0_i32_0 = arith.constant 0 : i32
    %c0_i32_1 = arith.constant 0 : i32
    return %c0_i32, %c0_i32_0 : i32, i32
  }
  func.func @transform_4(%arg0: i32) -> (i32, i32) {
    %c0_i32 = arith.constant 0 : i32
    %c0_i32_0 = arith.constant 0 : i32
    %c0_i32_1 = arith.constant 0 : i32
    return %c0_i32, %c0_i32_0 : i32, i32
  }
  func.func @transform_5(%arg0: i32) -> (i32, i32) {
    %c0_i32 = arith.constant 0 : i32
    %c0_i32_0 = arith.constant 0 : i32
    return %arg0, %c0_i32 : i32, i32
  }
}

</mosaic_0001>

<bundles_post_ra>
// kernel: gin_mlp.1
= control target key start
LH: loop header
LB: loop body
LE: loop exit
PB: predicated region body
PF: predicated region fallthrough
CT: control target
= control target key end

     0   :  { %10 = vsyncpa [#allocation3], 0  ;;  %s809_s0 = inlined_call_operand.vmem [shape: bf16[16,16], index: 0, kind: input, shape index: {}]   ;;  %s810_s1 = inlined_call_operand.vmem [shape: bf16[16,128], index: 1, kind: input, shape index: {}]   ;;  %s811_s2 = inlined_call_operand.vmem [shape: f32[1,128], index: 2, kind: input, shape index: {}]   ;;  %s812_s3 = inlined_call_operand.vmem [shape: bf16[128,32], index: 3, kind: input, shape index: {}]   ;;  %s813_s4 = inlined_call_operand.vmem [shape: f32[1,32], index: 4, kind: input, shape index: {}]   ;;  %s814_s5 = inlined_call_operand.hbm [shape: f32[16,32], index: 5, kind: output, shape index: {}]  }
   0x1   :  { %12 = vsyncpa [#allocation3 + $0x1], 0  ;;  %s676_s18 = smov 0   ;;  %s678_s19 = smov 0  }
   0x2   :  { %s680_s20 = smov 0   ;;  %s682_s21 = smov 0  }
   0x3 LB: > { %s697_s22 = sadd.s32 4294967295, %s641_s21   ;;  %s470_s23 = sadd.s32 4294967294, %s641_s21   ;;  %s641_s21 = sphi %s682_s21, %s820_s21   ;;  %s637_s20 = sphi %s680_s20, %s819_s20   ;;  %s633_s19 = sphi %s678_s19, %s818_s19   ;;  %s629_s18 = sphi %s676_s18, %s817_s18  }
   0x4   : > { %s701_s24 = sadd.s32 1, %s641_s21   ;;  %s135_s25 = sadd.s32 1, %s637_s20 }
   0x5   : > { %s132_s26 = ssub.s32 %s641_s21, %s701_s24  ;;  %p145_p0 = scmp.ne.s32.totalorder %s637_s20, %s633_s19 }
   0x6   : > { %p133_p1 = scmp.eq.s32.totalorder %s132_s26, 0  ;;  %p146_p2 = scmp.eq.s32.totalorder %s697_s22, 1 }
   0x7   : > { %p151_p3 = scmp.ne.s32.totalorder %s633_s19, %s629_s18  ;;  %p152_p4 = scmp.eq.s32.totalorder %s470_s23, 1 }
   0x8   : > { %s712_s27 = scalar_select %p133_p1, %s637_s20, %s135_s25  }
   0x9   : > { %p714_p5 = por %p146_p2, %p145_p0  ;;  %p718_p6 = por %p152_p4, %p151_p3 }
   0xa   : > { %p473_p7 = scmp.ge.s32.totalorder %s641_s21, 1  ;;  %p189_p8 = scmp.lt.s32.totalorder %s641_s21, 3 }
   0xc   : > { %p190_p9 = pnand %p473_p7, %p189_p8 }
   0xd   : > { %v570_v0 = vld [vmem:[%s810_s1] sm:$0xff] (!%p190_p9)   ;;  %v643_v1 = vmov (!%p190_p9), 0.0   ;;  %p216_p10 = scmp.lt.s32.totalorder (!%p190_p9), %s697_s22, 1  ;;  %vm644_vm0 = vmmov (!%p190_p9), 0   ;;  %v572_v3 = vld [vmem:[%s812_s3 + $0x8] sm:$0xff] (!%p190_p9)   ;;  %vm237_vm1 = vcmask (!%p190_p9), 130048  }
   0xe   : > { %193 = sbr.rel (%p190_p9) target bundleno = 474 (0x1da), region = 40  ;;  %503 = vmatprep.subr.bf16.mxu0 (!%p190_p9), %v643_v1  ;;  %509 = vmatprep.subr.bf16.mxu1 (!%p190_p9), %v643_v1  ;;  %v571_v2 = vld [vmem:[%s812_s3] sm:$0xff] (!%p190_p9)   ;;  %v573_v5 = vld [vmem:[%s812_s3 + $0x10] sm:$0xff] (!%p190_p9)   ;;  %v574_v6 = vld [vmem:[%s812_s3 + $0x18] sm:$0xff] (!%p190_p9)   ;;  %s213_s14 = sand.u32 (!%p190_p9), 1, %s633_s19   ;;  %vm395_vm2 = vcmask (!%p190_p9), 261120  }
   0xf   : > { %504 = vmatpush3.bf16.msra.mxu0 (!%p190_p9), %v570_v0  ;;  %505 = vmatprep.mubr.msk.bf16.mxu0 (!%p190_p9), %vm644_vm0, %v643_v1  ;;  %v575_v7 = vld [vmem:[%s812_s3 + $0x20] sm:$0xff] (!%p190_p9)   ;;  %v576_v8 = vld [vmem:[%s812_s3 + $0x28] sm:$0xff] (!%p190_p9)   ;;  %v577_v9 = vld [vmem:[%s812_s3 + $0x30] sm:$0xff] (!%p190_p9)   ;;  %s489_s23 = sshll.u32 (!%p190_p9), %s697_s22, 7 }
  0x10   : > { %510 = vmatpush3.bf16.msra.mxu1 (!%p190_p9), %v571_v2  ;;  %525 = vmatprep.mubr.msk.bf16.mxu1 (!%p190_p9), %vm644_vm0, %v643_v1  ;;  %v578_v10 = vld [vmem:[%s812_s3 + $0x38] sm:$0xff] (!%p190_p9)   ;;  %v476_v11 = vld [vmem:[%s811_s2] ss:$0 sm:$0xff] (!%p190_p9)  ;;  %s767_s7 = scalar_lea.hbm (!%p190_p9), %s814_s5, %s489_s23 }
  0x11   : > { %511 = vmatprep.subr.bf16.mxu1 (!%p190_p9), %v643_v1  ;;  %v479_v19 = vld [vmem:[%s813_s4] ss:$0 sm:$0xff] (!%p190_p9) }
  0x14   : > { %512 = vmatpush3.bf16.msra.mxu1 (!%p190_p9), %v572_v3 }
  0x15   : > { %s217_s9 = scalar_select %p216_p10, %s697_s22, 1  ;;  %513 = vmatprep.subr.bf16.mxu1 %v643_v1 }
  0x16   : > { %s398_s22 = scalar_lea.sflag [#allocation3], %s213_s14 }
  0x17   : > { %s475_s12 = sshll.u32 %s217_s9, 2  ;;  %s645_s9 = smov [#allocation2]  }
  0x18   : > { %s219_s15 = scalar_lea.vmem %s809_s0, %s475_s12  ;;  %514 = vmatpush3.bf16.msra.mxu1 %v573_v5  ;;  %s583_s10 = sshll.u32 %s645_s9, 4  ;;  %s584_s10 = int_to_ptr.vmem [resolvable:$false] %s583_s10 }
  0x19   : > { %v221_v4 = vld [vmem:[%s219_s15] sm:$0xf]  ;;  %515 = vmatprep.subr.bf16.mxu1 %v643_v1  ;;  %s474_s15 = sshll.u32 %s213_s14, 3  ;;  %s585_s11 = scalar_lea.vmem %s584_s10, 256 }
  0x1a   : > { %506 = vmatmul.mubr.msk.bf16.vlgmr.msra.gmra.mrb[0].mxu0 %vm237_vm1, %v221_v4  ;;  %s215_s25 = scalar_lea.vmem [#allocation2], %s474_s15 }
  0x1b   : > { %s411_s26 = sshll.u32 %s215_s25, 4  ;;  %s769_s26 = int_to_ptr.vmem [resolvable:$true] %s411_s26 }
  0x1c   : > { %516 = vmatpush3.bf16.msra.mxu1 %v574_v6  ;;  %s579_s8 = scalar_lea.vmem %s769_s26, 128  ;;  %p586_p0 = scmp.lt.s32.totalorder %s769_s26, %s584_s10 }
  0x1d   : > { %517 = vmatprep.subr.bf16.mxu1 %v643_v1  ;;  %p580_p11 = scmp.ne.s32.totalorder %s769_s26, %s579_s8  ;;  %p587_p1 = scmp.lt.s32.totalorder %s585_s11, %s579_s8 }
  0x1f   : > { %p581_p12 = pnand %p580_p11, %p714_p5  ;;  %p588_p2 = por %p587_p1, %p586_p0 }
  0x20   : > { %518 = vmatpush3.bf16.msra.mxu1 %v575_v7 }
  0x21   : > { %519 = vmatprep.subr.bf16.mxu1 %v643_v1  ;;  %p582_p13 = pneg %p581_p12 }
  0x23   : > { %p589_p3 = pnand %p588_p2, %p582_p13 }
  0x24   : > { %520 = vmatpush3.bf16.msra.mxu1 %v576_v8 }
  0x25   : > { %521 = vmatprep.subr.bf16.mxu1 %v643_v1 }
  0x28   : > { %522 = vmatpush3.bf16.msra.mxu1 %v577_v9 }
  0x29   : > { %523 = vmatprep.subr.bf16.mxu1 %v643_v1 }
  0x2c   : > { %524 = vmatpush3.bf16.msra.mxu1 %v578_v10 }
  0xed   : > { %v275_v12 = vpop.f32.mrb[0].mxu0 }
  0xee   : > { %v276_v13 = vadd.f32 %v476_v11, %v275_v12  ;;  %v507_v14 = vpop.f32.mrb[1].mxu0 }
  0xef   : > { %v278_v15 = vpop.f32.mrb[2].mxu0 }
  0xf0   : > { %v281_v16 = vmax.f32 %v276_v13, 0.0  ;;  %v508_v17 = vpop.f32.mrb[3].mxu0 }
  0xf2   : > { %v282_v18 = vpack.c.bf16 %v281_v16, %v281_v16 }
  0xf4   : > { %526 = vmatmul.mubr.bf16.vlgmr.msra.gmra.mrb[0].mxu1 %v282_v18 }
 0x1c7   : > { %v388_v20 = vpop.f32.mrb[0].mxu1 }
 0x1c8   : > { %v389_v21 = vadd.f32 %v479_v19, %v388_v20  ;;  %v527_v22 = vpop.f32.mrb[1].mxu1 }
 0x1c9   : > { %v391_v23 = vpop.f32.mrb[2].mxu1 }
 0x1ca   : > { %v394_v24 = vmax.f32 %v389_v21, 0.0  ;;  %v528_v25 = vpop.f32.mrb[3].mxu1 }
 0x1cc   : > { %396 = vst.msk [vmem:[%s215_s25] sm:$0xff] %vm395_vm2, %v394_v24 }
 0x1cd   : > { %592 = shalt.err (!%p589_p3)
}
 0x1ce   : > { %s593_s12 = scalar_lea.hbm %s767_s7, 128  ;;  %s597_s15 = scalar_lea.hbm %s814_s5, 256 }
 0x1cf   : > { %p594_p4 = scmp.ne.s32.totalorder %s767_s7, %s593_s12  ;;  %p598_p9 = scmp.lt.u32.totalorder %s767_s7, %s814_s5 }
 0x1d0   : > { %p599_p10 = scmp.lt.u32.totalorder %s597_s15, %s593_s12  ;;  %p601_p12 = scmp.lt.u32.totalorder %s593_s12, %s767_s7 }
 0x1d1   : > { %p595_p7 = pnand %p594_p4, %p714_p5 }
 0x1d2   : > { %p600_p11 = por %p599_p10, %p598_p9 }
 0x1d3   : > { %p596_p8 = pneg %p595_p7 }
 0x1d4   : > { %p602_p13 = por %p601_p12, %p600_p11 }
 0x1d6   : > { %p603_p0 = pnand %p602_p13, %p596_p8 }
 0x1d8   : > { %606 = shalt.err (!%p603_p0)
}
 0x1d9   : > { %529 = dma.vmem_to_hbm [thread:$0]  (%p714_p5), %s769_s26, 128, %s767_s7, %s398_s22  }
 0x1da PF: > { %p535_p1 = scmp.ge.s32.totalorder %s641_s21, 2  ;;  %s423_s23 = sand.u32 1, %s629_s18  }
 0x1db   : > { %s424_s25 = scalar_lea.sflag [#allocation3], %s423_s23 }
 0x1dc   : > { %p532_p2 = pnand %p535_p1, %p718_p6 }
 0x1de   : > { %624 = dma.done.wait (!%p532_p2), %s424_s25, 128  }
 0x1df   : > { %626 = vsyncadd (!%p532_p2), %s424_s25, 4294967168  ;;  %p15_p3 = scmp.ge.s32.totalorder %s701_s24, 4   ;;  %s817_s18 = smov %s633_s19 }
 0x1e0   : > { %s818_s19 = smov %s637_s20  ;;  %s819_s20 = smov %s712_s27 }
 0x1e1   : > { %s820_s21 = smov %s701_s24  ;;  %17 = sbr.rel (!%p15_p3) target bundleno = 3 (0x3), region = 75 }
 0x1e8   :  { %429 = vsyncpa [#allocation3], 1 }
 0x1e9   :  { %431 = vsyncpa [#allocation3 + $0x1], 1 }

</bundles_post_ra>
